<compile_context>
chip_gen: v7x
topology: tpu7x:2x2x1
jax: 0.10.0
libtpu: 0.0.40
codegen_flags: <defaults>
</compile_context>

<pallas_src>
import math

import jax
import jax.numpy as jnp
from jax.experimental import pallas as pl
from jax.experimental.pallas import tpu as pltpu


def _round_up(x, m):
    return ((x + m - 1) // m) * m


def _pick_token_tile(n_pad128, token_tile):
    """Largest multiple-of-128 divisor of n_pad128 that is <= token_tile."""
    d = n_pad128 // 128
    cap = max(1, min(token_tile // 128, d))
    for m in range(cap, 0, -1):
        if d % m == 0:
            return m * 128
    return 128


def _embed_kernel(idx_ref, table_t_ref, out_ref):
    """Fused 3-way embedding gather as a transposed one-hot MXU matmul.

    idx_ref     : (1, TN)   int32 token ids (lane-dense)
    table_t_ref : (3E, V)   bf16 combined table [emb_1 | emb_2 | emb_3]^T, col 0 == 0
    out_ref     : (3E, TN)  gathered embeddings, transposed (lane-dense stores)
    """
    idx = idx_ref[...]                                              # (1, TN)
    v = table_t_ref.shape[1]
    tn = idx.shape[1]
    vocab_iota = jax.lax.broadcasted_iota(jnp.int32, (v, tn), 0)    # (V, TN)
    # Build the one-hot directly in the MXU input dtype (0/1 is exact in bf16),
    # skipping any f32 intermediate materialization.
    onehot = (vocab_iota == idx).astype(table_t_ref.dtype)          # (V, TN)
    acc = jnp.dot(table_t_ref[...], onehot,
                  preferred_element_type=jnp.float32)               # (3E, TN) f32
    out_ref[...] = acc.astype(out_ref.dtype)


def embed_lookup_t(idx_flat, table_t, *, token_tile=8192, out_dtype=jnp.bfloat16):
    """idx_flat: (N,) int ; table_t: (3E, V) -> (3E, N) in out_dtype (N on lanes).

    token_tile is large (amortizes per-grid-step overhead toward the HBM
    roofline); at TN=8192 the per-step VMEM (one-hot + iota + double-buffered
    idx/out blocks + resident table) is ~8 MiB, safe on v5e/v6e/v7x defaults.
    """
    n = idx_flat.shape[0]
    e3, v = table_t.shape

    n_pad = _round_up(n, 128)
    tn = _pick_token_tile(n_pad, token_tile)

    idx = idx_flat.astype(jnp.int32)
    if n_pad != n:
        # Pad index 0 selects the zero padding row (harmless); sliced off below.
        idx = jnp.pad(idx, (0, n_pad - n))
    idx = idx.reshape(1, n_pad)

    out_t = pl.pallas_call(
        _embed_kernel,
        out_shape=jax.ShapeDtypeStruct((e3, n_pad), out_dtype),
        grid=(n_pad // tn,),
        in_specs=[
            pl.BlockSpec((1, tn), lambda i: (0, i)),     # token ids, lane-dense
            pl.BlockSpec((e3, v), lambda i: (0, 0)),     # 12 KiB table, resident
        ],
        out_specs=pl.BlockSpec((e3, tn), lambda i: (0, i)),
        compiler_params=pltpu.CompilerParams(
            dimension_semantics=("parallel",)            # megacore sharding (v7x)
        ),
    )(idx, table_t)

    if n_pad != n:
        out_t = out_t[:, :n]
    return out_t


def init_params(key, emb_dim, vocab_pad=128, table_dtype=jnp.bfloat16):
    """Deterministic init matching nn.Embedding(N(0,1)) with padding_idx=0 zeroed.

    Returns the combined table transposed, (3*emb_dim, 128), vocab dim
    zero-padded to 128 for an aligned K=128 MXU contraction, stored in bf16
    (single-pass MXU operand; the one-hot gather remains an exact selection).
    """
    k1, k2, k3 = jax.random.split(key, 3)

    def make(k, vocab):
        w = jax.random.normal(k, (vocab, emb_dim), jnp.float32)
        return w.at[0].set(0.0)  # padding_idx=0

    e1 = make(k1, 21)
    e2 = make(k2, 42)
    e3 = make(k3, 84)
    pad = lambda w: jnp.pad(w, ((0, vocab_pad - w.shape[0]), (0, 0)))
    combined = jnp.concatenate([pad(e1), pad(e2), pad(e3)], axis=1)  # (128, 3E)
    return {"table_t": combined.T.astype(table_dtype)}               # (3E, 128)


def axialbackbone_forward(x, params, emb_dim, *, out_dtype=jnp.bfloat16):
    """x: (B, H, W) int32 token grid  ->  (B, 3, H*r, W*r) feature map.

    out_dtype defaults to bf16 (halves HBM writeback + pixel-shuffle traffic);
    pass jnp.float32 to mirror the PyTorch f32 embedding output dtype exactly.
    """
    B, H, W = x.shape
    r = int(math.sqrt(emb_dim))
    assert r * r == emb_dim, "emb_dim must be a perfect square (PixelShuffle)"

    n = B * H * W
    e_t = embed_lookup_t(x.reshape(n), params["table_t"],
                         out_dtype=out_dtype)                        # (3E, N)

    # permute(0,3,1,2) + PixelShuffle(r) per table, then cat(dim=1):
    #   out[b, t, h*r + i, w*r + j] = emb_t[x[b,h,w], i*r + j]
    # NOTE(perf): this transpose IS PixelShuffle's data movement (one HBM
    # read+write of the feature map). With W*r < 128 (demo: 32) writing the
    # final layout from the kernel would force masked (<128-lane) stores, so the
    # kernel keeps the lane-dense token layout and the reorder stays here.
    # TODO(synk): for W*r >= 128 fuse this reorder into the kernel (grid over
    # (b, h)-row blocks + a final-layout out BlockSpec), or have the consumer
    # read the (3E, N) token layout from embed_lookup_t() directly.
    e = e_t.reshape(3, r, r, B, H, W)
    e = jnp.transpose(e, (3, 0, 4, 1, 5, 2))                        # (B,3,H,r,W,r)
    feat = e.reshape(B, 3, H * r, W * r)

    # TODO(synk): axialnet.AxialAttentionNet(AxialBlock, [1,2,4,1], ...) backbone
    # source is not provided with the module; only the embedding + pixel-shuffle
    # + concat front end (the backbone's input) is implemented here.
    return feat


if __name__ == "__main__":
    emb_dim = 16        # r = 4
    winding_size = 8    # token grid H = W = 8  ->  feature map 32 x 32
    B = 2

    key = jax.random.PRNGKey(0)
    pkey, xkey, xkey2 = jax.random.split(key, 3)
    params = init_params(pkey, emb_dim)
    # Valid indices for all three sub-vocabs lie in [0, 21), mirroring PyTorch,
    # where out-of-range ids would raise in nn.Embedding(21, ...).
    x = jax.random.randint(
        xkey, (B, winding_size, winding_size), 0, 21, dtype=jnp.int32
    )

    out = axialbackbone_forward(x, params, emb_dim)
    out = jax.block_until_ready(out)

    # Correctness: Pallas fused gather vs plain-JAX take on the same bf16 table
    # (bf16 one-hot x bf16 table with f32 accumulation is an exact selection).
    r = int(math.sqrt(emb_dim))
    table = params["table_t"].T                                     # (128, 3E)
    ref = jnp.take(table, x.reshape(-1), axis=0)                    # (N, 3E)
    ref = ref.reshape(B, winding_size, winding_size, 3, r, r)
    ref = jnp.transpose(ref, (0, 3, 1, 4, 2, 5)).reshape(
        B, 3, winding_size * r, winding_size * r
    )
    assert out.shape == (B, 3, winding_size * r, winding_size * r)
    assert jnp.allclose(out.astype(jnp.float32), ref.astype(jnp.float32),
                        atol=1e-6, rtol=0.0), "mismatch vs reference gather"

    # Secondary check: exercise a multi-step grid and the padded/slice path.
    idx2 = jax.random.randint(xkey2, (300,), 0, 21, dtype=jnp.int32)
    got2 = embed_lookup_t(idx2, params["table_t"], token_tile=128)   # 3 grid steps
    ref2 = jnp.take(params["table_t"].T, idx2, axis=0).T             # (3E, 300)
    got2 = jax.block_until_ready(got2)
    assert jnp.allclose(got2.astype(jnp.float32), ref2.astype(jnp.float32),
                        atol=1e-6, rtol=0.0), "mismatch on tiled/padded path"

    print("KERNEL_OK")
</pallas_src>

<mosaic_0001>
module attributes {stable_mosaic.version = 11 : i64} {
  func.func @_embed_kernel(%arg0: i32, %arg1: memref<1x128xi32, #tpu.memory_space<vmem>>, %arg2: memref<48x128xbf16, #tpu.memory_space<vmem>>, %arg3: memref<48x128xbf16, #tpu.memory_space<vmem>>) attributes {dimension_semantics = [#tpu.dimension_semantics<parallel>], iteration_bounds = array<i64: 1>, scalar_prefetch = 0 : i64, scratch_operands = 0 : i64, tpu.core_type = #tpu.core_type<tc>, window_params = [{transform_indices = @transform_0, window_bounds = array<i64: 1, 128>}, {pipeline_mode = #tpu.pipeline_mode<synchronous>, transform_indices = @transform_1, window_bounds = array<i64: 48, 128>}, {transform_indices = @transform_2, window_bounds = array<i64: 48, 128>}]} {
    %c0 = arith.constant 0 : index
    %c0_0 = arith.constant 0 : index
    %0 = vector.load %arg1[%c0, %c0_0] : memref<1x128xi32, #tpu.memory_space<vmem>>, vector<1x128xi32>
    %1 = tpu.iota {dimensions = array<i32: 0>} : vector<128x128xi32>
    %2 = vector.broadcast %0 : vector<1x128xi32> to vector<128x128xi32>
    %3 = arith.cmpi eq, %1, %2 : vector<128x128xi32>
    %4 = arith.extui %3 : vector<128x128xi1> to vector<128x128xi32>
    %5 = arith.sitofp %4 : vector<128x128xi32> to vector<128x128xf32>
    %6 = arith.truncf %5 : vector<128x128xf32> to vector<128x128xbf16>
    %c0_1 = arith.constant 0 : index
    %c0_2 = arith.constant 0 : index
    %7 = vector.load %arg2[%c0_1, %c0_2] : memref<48x128xbf16, #tpu.memory_space<vmem>>, vector<48x128xbf16>
    %cst = arith.constant dense<0.000000e+00> : vector<48x128xf32>
    %8 = tpu.matmul %7, %6, %cst {dimension_numbers = #tpu.dot_dimension_numbers<[1], [0], [0], [1], [0, 0, 1, 1], [], []>} : vector<48x128xbf16>, vector<128x128xbf16>, vector<48x128xf32> -> vector<48x128xf32>
    %9 = arith.truncf %8 : vector<48x128xf32> to vector<48x128xbf16>
    %c0_3 = arith.constant 0 : index
    %c0_4 = arith.constant 0 : index
    %10 = vector.load %arg3[%c0_3, %c0_4] : memref<48x128xbf16, #tpu.memory_space<vmem>>, vector<48x128xbf16>
    tpu.vector_store %arg3[%c0_3, %c0_4], %9 {strides = array<i32>} : memref<48x128xbf16, #tpu.memory_space<vmem>>, vector<48x128xbf16>,
    return
  }
  func.func @transform_0(%arg0: i32) -> (i32, i32) {
    %c0_i32 = arith.constant 0 : i32
    %c0_i32_0 = arith.constant 0 : i32
    return %c0_i32, %arg0 : i32, i32
  }
  func.func @transform_1(%arg0: i32) -> (i32, i32) {
    %c0_i32 = arith.constant 0 : i32
    %c0_i32_0 = arith.constant 0 : i32
    %c0_i32_1 = arith.constant 0 : i32
    return %c0_i32, %c0_i32_0 : i32, i32
  }
  func.func @transform_2(%arg0: i32) -> (i32, i32) {
    %c0_i32 = arith.constant 0 : i32
    %c0_i32_0 = arith.constant 0 : i32
    return %c0_i32, %arg0 : i32, i32
  }
}

</mosaic_0001>

<bundles_post_ra>
// kernel: tpu_custom_call.1
= control target key start
LH: loop header
LB: loop body
LE: loop exit
PB: predicated region body
PF: predicated region fallthrough
CT: control target
= control target key end

     0   :  { %7 = vsyncpa [#allocation3], 0  ;;  %s561_s0 = inlined_call_operand.hbm [shape: s32[1,128], index: 0, kind: input, shape index: {}]   ;;  %s562_s1 = inlined_call_operand.hbm [shape: bf16[48,128], index: 1, kind: input, shape index: {}]   ;;  %s563_s2 = inlined_call_operand.hbm [shape: bf16[48,128], index: 2, kind: output, shape index: {}]  }
   0x1   :  { %8 = vsyncpa [#allocation6], 0 }
   0x2   :  { %9 = vsyncpa [#allocation4], 0  ;;  %s449_s9 = smov [#allocation2]   ;;  %s450_s11 = smov [#allocation5]  }
   0x3   :  { %s16_s10 = sshll.u32 %s449_s9, 4  ;;  %s25_s12 = sshll.u32 %s450_s11, 4  ;;  %s17_s10 = int_to_ptr.vmem [resolvable:$true] %s16_s10  ;;  %s472_s12 = int_to_ptr.vmem [resolvable:$true] %s25_s12 }
   0x4   :  { %s377_s15 = scalar_lea.hbm %s561_s0, 16 }
   0x5   :  { %p378_p0 = scmp.ne.s32.totalorder %s561_s0, %s377_s15  ;;  %p381_p1 = scmp.lt.u32.totalorder %s377_s15, %s561_s0 }
   0x7   :  { %p383_p2 = pnand %p381_p1, %p378_p0 }
   0x9   :  { %386 = shalt.err (!%p383_p2)
}
   0xa   :  { %s387_s20 = scalar_lea.vmem %s17_s10, 16  ;;  %s391_s21 = scalar_lea.vmem %s17_s10, 32 }
   0xb   :  { %p388_p3 = scmp.ne.s32.totalorder %s17_s10, %s387_s20  ;;  %p392_p4 = scmp.lt.s32.totalorder %s17_s10, %s17_s10 }
   0xc   :  { %p393_p5 = scmp.lt.s32.totalorder %s391_s21, %s387_s20 }
   0xe   :  { %p394_p6 = por %p393_p5, %p392_p4 }
  0x10   :  { %p395_p7 = pnand %p394_p6, %p388_p3 }
  0x12   :  { %398 = shalt.err (!%p395_p7)
}
  0x13   :  { %19 = dma.hbm_to_vmem [thread:$0]  %s561_s0, 16, %s17_s10, [#allocation3]  }
  0x14   :  { %s399_s26 = scalar_lea.hbm %s562_s1, 384 }
  0x15   :  { %p400_p8 = scmp.ne.s32.totalorder %s562_s1, %s399_s26  ;;  %p403_p9 = scmp.lt.u32.totalorder %s399_s26, %s562_s1 }
  0x17   :  { %p405_p10 = pnand %p403_p9, %p400_p8 }
  0x19   :  { %408 = shalt.err (!%p405_p10)
}
  0x1a   :  { %s409_s3 = scalar_lea.vmem %s472_s12, 384  ;;  %p414_p12 = scmp.lt.s32.totalorder %s472_s12, %s472_s12 }
  0x1b   :  { %p410_p11 = scmp.ne.s32.totalorder %s472_s12, %s409_s3  ;;  %p415_p13 = scmp.lt.s32.totalorder %s409_s3, %s409_s3 }
  0x1d   :  { %p416_p0 = por %p415_p13, %p414_p12 }
  0x1f   :  { %p417_p1 = pnand %p416_p0, %p410_p11 }
  0x21   :  { %420 = shalt.err (!%p417_p1)
}
  0x22   :  { %s451_s0 = smov 64   ;;  %s452_s4 = smov 4  }
  0x23   :  { %31 = dma.hbm_to_vmem [thread:$0]  %s562_s1, 384, %s472_s12, [#allocation6], %s451_s0, %s451_s0, %s452_s4  }
  0x24   :  { %443 = dma.done.wait [#allocation3], 16  }
  0x25   :  { %444 = vsyncadd [#allocation3], 4294967280 }
  0x26   :  { %445 = dma.done.wait [#allocation6], 384  }
  0x27   :  { %446 = vsyncadd [#allocation6], 4294966912  ;;  %v40_v0 = vlaneseq  ;;  %v453_v1 = vmov 0.0   ;;  %vm454_vm0 = vmmov 0   ;;  %v512_v6 = vld [vmem:[#allocation2] ss:$0 sm:$0xff] }
  0x28   :  { %350 = vmatprep.subr.bf16.mxu1 %v453_v1  ;;  %322 = vmatprep.subr.bf16.mxu0 %v453_v1  ;;  %v455_v9 = vmov 1.0|1.0   ;;  %v374_v20 = vld [vmem:[#allocation5 + $0x8] sm:$0xff]   ;;  %v375_v21 = vld [vmem:[#allocation5] sm:$0xff]   ;;  %v376_v22 = vld [vmem:[#allocation5 + $0x10] sm:$0xff]   ;;  %s456_s1 = smov [#allocation7]  }
  0x29   :  { %v41_v2 = vshrl.u32 %v40_v0, 7  ;;  %342 = vmatprep.mubr.msk.bf16.mxu1 %vm454_vm0, %v453_v1  ;;  %338 = vmatprep.mubr.msk.bf16.mxu0 %vm454_vm0, %v453_v1  ;;  %s233_s7 = sshll.u32 %s456_s1, 4  ;;  %s234_s7 = int_to_ptr.vmem [resolvable:$true] %s233_s7 }
  0x2a   :  { %s421_s8 = scalar_lea.vmem %s234_s7, 384  ;;  %p426_p3 = scmp.lt.s32.totalorder %s234_s7, %s234_s7 }
  0x2b   :  { %v42_v3 = vadd.s32 8, %v41_v2  ;;  %v43_v4 = vadd.s32 16, %v41_v2  ;;  %v44_v5 = vadd.s32 24, %v41_v2  ;;  %v45_v7 = vadd.s32 32, %v41_v2  ;;  %p422_p2 = scmp.ne.s32.totalorder %s234_s7, %s421_s8  ;;  %p427_p4 = scmp.lt.s32.totalorder %s421_s8, %s421_s8 }
  0x2c   :  { %v46_v8 = vadd.s32 40, %v41_v2  ;;  %vm61_vm1 = vcmp.eq.s32.totalorder %v41_v2, %v512_v6  ;;  %v47_v10 = vadd.s32 48, %v41_v2  ;;  %v48_v11 = vadd.s32 56, %v41_v2 }
  0x2d   :  { %vm62_vm2 = vcmp.eq.s32.totalorder %v42_v3, %v512_v6  ;;  %vm63_vm3 = vcmp.eq.s32.totalorder %v43_v4, %v512_v6  ;;  %vm64_vm4 = vcmp.eq.s32.totalorder %v44_v5, %v512_v6  ;;  %vm65_vm7 = vcmp.eq.s32.totalorder %v45_v7, %v512_v6  ;;  %p428_p5 = por %p427_p4, %p426_p3 }
  0x2e   :  { %vm266_vm5 = vmpackc.low %vm62_vm2, %vm61_vm1  ;;  %vm66_vm8 = vcmp.eq.s32.totalorder %v46_v8, %v512_v6  ;;  %vm67_vm10 = vcmp.eq.s32.totalorder %v47_v10, %v512_v6  ;;  %vm68_vm11 = vcmp.eq.s32.totalorder %v48_v11, %v512_v6  ;;  %v49_v12 = vadd.s32 64, %v41_v2 }
  0x2f   :  { %358 = vmatpush3.bf16.msk.msra.mxu1 %vm266_vm5, %v455_v9  ;;  %323 = vmatpush3.bf16.msk.msra.mxu0 %vm266_vm5, %v455_v9  ;;  %vm268_vm6 = vmpackc.low %vm64_vm4, %vm63_vm3  ;;  %v50_v13 = vadd.s32 72, %v41_v2  ;;  %v51_v14 = vadd.s32 80, %v41_v2  ;;  %v52_v15 = vadd.s32 88, %v41_v2  ;;  %v53_v16 = vadd.s32 96, %v41_v2  ;;  %p429_p6 = pnand %p428_p5, %p422_p2 }
  0x30   :  { %351 = vmatprep.subr.bf16.mxu1 %v453_v1  ;;  %324 = vmatprep.subr.bf16.mxu0 %v453_v1  ;;  %vm270_vm9 = vmpackc.low %vm66_vm8, %vm65_vm7  ;;  %vm69_vm13 = vcmp.eq.s32.totalorder %v49_v12, %v512_v6  ;;  %v54_v17 = vadd.s32 104, %v41_v2  ;;  %v55_v18 = vadd.s32 112, %v41_v2  ;;  %v56_v19 = vadd.s32 120, %v41_v2 }
  0x31   :  { %vm272_vm12 = vmpackc.low %vm68_vm11, %vm67_vm10  ;;  %vm70_vm14 = vcmp.eq.s32.totalorder %v50_v13, %v512_v6  ;;  %vm71_vm1 = vcmp.eq.s32.totalorder %v51_v14, %v512_v6  ;;  %vm72_vm2 = vcmp.eq.s32.totalorder %v52_v15, %v512_v6  ;;  %vm73_vm4 = vcmp.eq.s32.totalorder %v53_v16, %v512_v6 }
  0x32   :  { %vm274_vm15 = vmpackc.low %vm70_vm14, %vm69_vm13  ;;  %vm74_vm5 = vcmp.eq.s32.totalorder %v54_v17, %v512_v6  ;;  %vm75_vm7 = vcmp.eq.s32.totalorder %v55_v18, %v512_v6  ;;  %vm76_vm8 = vcmp.eq.s32.totalorder %v56_v19, %v512_v6 }
  0x33   :  { %359 = vmatpush3.bf16.msk.msra.mxu1 %vm268_vm6, %v455_v9  ;;  %325 = vmatpush3.bf16.msk.msra.mxu0 %vm268_vm6, %v455_v9  ;;  %vm276_vm3 = vmpackc.low %vm72_vm2, %vm71_vm1 }
  0x34   :  { %352 = vmatprep.subr.bf16.mxu1 %v453_v1  ;;  %326 = vmatprep.subr.bf16.mxu0 %v453_v1  ;;  %vm278_vm6 = vmpackc.low %vm74_vm5, %vm73_vm4 }
  0x37   :  { %360 = vmatpush3.bf16.msk.msra.mxu1 %vm270_vm9, %v455_v9  ;;  %327 = vmatpush3.bf16.msk.msra.mxu0 %vm270_vm9, %v455_v9  ;;  %vm280_vm9 = vmpackc.low %vm76_vm8, %vm75_vm7 }
  0x38   :  { %353 = vmatprep.subr.bf16.mxu1 %v453_v1  ;;  %328 = vmatprep.subr.bf16.mxu0 %v453_v1 }
  0x3b   :  { %361 = vmatpush3.bf16.msk.msra.mxu1 %vm272_vm12, %v455_v9  ;;  %329 = vmatpush3.bf16.msk.msra.mxu0 %vm272_vm12, %v455_v9 }
  0x3c   :  { %354 = vmatprep.subr.bf16.mxu1 %v453_v1  ;;  %330 = vmatprep.subr.bf16.mxu0 %v453_v1 }
  0x3f   :  { %362 = vmatpush3.bf16.msk.msra.mxu1 %vm274_vm15, %v455_v9  ;;  %331 = vmatpush3.bf16.msk.msra.mxu0 %vm274_vm15, %v455_v9 }
  0x40   :  { %355 = vmatprep.subr.bf16.mxu1 %v453_v1  ;;  %332 = vmatprep.subr.bf16.mxu0 %v453_v1 }
  0x43   :  { %363 = vmatpush3.bf16.msk.msra.mxu1 %vm276_vm3, %v455_v9  ;;  %333 = vmatpush3.bf16.msk.msra.mxu0 %vm276_vm3, %v455_v9 }
  0x44   :  { %356 = vmatprep.subr.bf16.mxu1 %v453_v1  ;;  %334 = vmatprep.subr.bf16.mxu0 %v453_v1 }
  0x47   :  { %364 = vmatpush3.bf16.msk.msra.mxu1 %vm278_vm6, %v455_v9  ;;  %335 = vmatpush3.bf16.msk.msra.mxu0 %vm278_vm6, %v455_v9 }
  0x48   :  { %357 = vmatprep.subr.bf16.mxu1 %v453_v1  ;;  %336 = vmatprep.subr.bf16.mxu0 %v453_v1 }
  0x4b   :  { %365 = vmatpush3.bf16.msk.msra.mxu1 %vm280_vm9, %v455_v9  ;;  %337 = vmatpush3.bf16.msk.msra.mxu0 %vm280_vm9, %v455_v9 }
  0x4e   :  { %343 = vmatmul.mubr.bf16.vlgmr.msra.gmra.mrb[0].mxu1 %v374_v20  ;;  %339 = vmatmul.mubr.bf16.vlgmr.msra.gmra.mrb[0].mxu0 %v375_v21 }
  0x4f   :  { %346 = vmatprep.mubr.msk.bf16.mxu1 %vm454_vm0, %v453_v1 }
  0x56   :  { %347 = vmatmul.mubr.bf16.gmra.mrb[4].mxu1 %v376_v22 }
 0x121   :  { %v183_v23 = vpop.f32.mrb[0].mxu1  ;;  %v175_v24 = vpop.f32.mrb[0].mxu0 }
 0x122   :  { %v344_v25 = vpop.f32.mrb[1].mxu1  ;;  %v340_v26 = vpop.f32.mrb[1].mxu0 }
 0x123   :  { %v186_v27 = vpop.f32.mrb[2].mxu1  ;;  %v178_v28 = vpop.f32.mrb[2].mxu0 }
 0x124   :  { %v302_v29 = vpack.c.bf16 %v186_v27, %v183_v23  ;;  %v345_v30 = vpop.f32.mrb[3].mxu1  ;;  %v297_v31 = vpack.c.bf16 %v178_v28, %v175_v24  ;;  %v341_v32 = vpop.f32.mrb[3].mxu0 }
 0x126   :  { %309 = vst [vmem:[#allocation7 + $0x8] sm:$0xff] %v302_v29   ;;  %298 = vst [vmem:[#allocation7] sm:$0xff] %v297_v31  }
 0x129   :  { %v191_v33 = vpop.f32.mrb[4].mxu1 }
 0x12a   :  { %v348_v34 = vpop.f32.mrb[5].mxu1 }
 0x12b   :  { %v194_v35 = vpop.f32.mrb[6].mxu1 }
 0x12c   :  { %v307_v36 = vpack.c.bf16 %v194_v35, %v191_v33  ;;  %v349_v37 = vpop.f32.mrb[7].mxu1 }
 0x12e   :  { %310 = vst [vmem:[#allocation7 + $0x10] sm:$0xff] %v307_v36  }
 0x12f   :  { %432 = shalt.err (!%p429_p6)
}
 0x130   :  { %s433_s11 = scalar_lea.hbm %s563_s2, 384 }
 0x131   :  { %p434_p7 = scmp.ne.s32.totalorder %s563_s2, %s433_s11  ;;  %p437_p8 = scmp.lt.u32.totalorder %s433_s11, %s563_s2 }
 0x133   :  { %p439_p9 = pnand %p437_p8, %p434_p7 }
 0x135   :  { %442 = shalt.err (!%p439_p9)
}
 0x136   :  { %239 = dma.vmem_to_hbm [thread:$0]  %s234_s7, 384, %s563_s2, [#allocation4], %s451_s0, %s451_s0, %s452_s4  }
 0x137   :  { %447 = dma.done.wait [#allocation4], 384  }
 0x138   :  { %448 = vsyncadd [#allocation4], 4294966912 }
 0x139   :  { %243 = vsyncpa [#allocation3], 1 }
 0x13a   :  { %244 = vsyncpa [#allocation6], 1 }
 0x13b   :  { %245 = vsyncpa [#allocation4], 1 }

</bundles_post_ra>
